<compile_context>
chip_gen: v6e
topology: v6e:2x2x1
jax: 0.10.0
libtpu: 0.0.40
codegen_flags: <defaults>
</compile_context>

<pallas_src>
import functools

import jax
import jax.numpy as jnp
from jax import lax
from jax.experimental import pallas as pl
from jax.experimental.pallas import tpu as pltpu

BERT_DIM = 768
DROP_P = 0.1
LANE = 128
SUBLANE = 8


def _round_up(x, m):
    return (x + m - 1) // m * m


def _text_embedder_kernel(
    cat_ref, col_ref, fab_ref,      # int32 [Bp, 1] (col/fab already offset)
    proj_ref,                       # f32 [Kp, Ep]  folded (table @ W) rows
    bias_ref,                       # f32 [1, Ep]
    rand_ref,                       # f32 [Bp, Ep]  uniform(0,1) for dropout
    out_ref,                        # f32 [Bp, Ep]
    *, train: bool,
):
    Bp = out_ref.shape[0]
    Kp = proj_ref.shape[0]

    # 1) One-hot "3-hot" gather matrix from the ids (vectorized, no row loop).
    lane = lax.broadcasted_iota(jnp.int32, (Bp, Kp), 1)
    onehot = (
        (lane == cat_ref[...])
        | (lane == col_ref[...])
        | (lane == fab_ref[...])
    ).astype(jnp.float32)

    # 2) Gather + mean-pool + Linear, all as one MXU matmul over the folded
    #    projected tables; scale by 1/3 (the mean) on the VPU afterwards so
    #    the one-hot entries stay exactly 1.0.
    y = jnp.dot(
        onehot, proj_ref[...],
        preferred_element_type=jnp.float32,
        precision=lax.Precision.HIGHEST,
    )
    y = y * (1.0 / 3.0) + bias_ref[...]

    # 3) Inverted dropout (train) / identity (eval). Randoms come in lane-dense.
    if train:
        keep = rand_ref[...] >= jnp.float32(DROP_P)
        y = jnp.where(keep, y * (1.0 / (1.0 - DROP_P)), jnp.zeros_like(y))

    out_ref[...] = y.astype(out_ref.dtype)


def init_params(key, embedding_dim, n_cat, n_col, n_fab):
    """Raw (unfolded) parameters: word tables + Linear weights."""
    k1, k2, k3, k4, k5 = jax.random.split(key, 5)
    # TODO(synk): real module uses a pretrained BERT pipeline; replaced by
    # deterministic synthetic word-embedding tables.
    cat_tab = jax.random.normal(k1, (n_cat, BERT_DIM), jnp.float32) * 0.02
    col_tab = jax.random.normal(k2, (n_col, BERT_DIM), jnp.float32) * 0.02
    fab_tab = jax.random.normal(k3, (n_fab, BERT_DIM), jnp.float32) * 0.02
    # nn.Linear(768, E) default init: U(-1/sqrt(768), 1/sqrt(768))
    bound = 1.0 / (BERT_DIM ** 0.5)
    w_t = jax.random.uniform(
        k4, (BERT_DIM, embedding_dim), jnp.float32, -bound, bound
    )
    b = jax.random.uniform(k5, (embedding_dim,), jnp.float32, -bound, bound)
    return cat_tab, col_tab, fab_tab, w_t, b


def prepare_kernel_params(params):
    """Fold the Linear into the tables and pad to lane/sublane-dense shapes."""
    cat_tab, col_tab, fab_tab, w_t, b = params
    n_cat, n_col, n_fab = cat_tab.shape[0], col_tab.shape[0], fab_tab.shape[0]
    E = w_t.shape[1]
    K = n_cat + n_col + n_fab

    concat = jnp.concatenate([cat_tab, col_tab, fab_tab], axis=0)   # [K, 768]
    proj = jnp.matmul(concat, w_t, precision=lax.Precision.HIGHEST)  # [K, E]

    Kp = _round_up(K, LANE)
    Ep = _round_up(E, LANE)
    proj_pad = jnp.zeros((Kp, Ep), jnp.float32).at[:K, :E].set(proj)
    bias_pad = jnp.zeros((1, Ep), jnp.float32).at[0, :E].set(b)
    return {
        "proj": proj_pad, "bias": bias_pad,
        "n_cat": n_cat, "n_col": n_col, "n_fab": n_fab, "emb_dim": E,
    }


def text_embedder_forward(category, color, fabric, kparams, *, key=None, train=True):
    """category/color/fabric: int32 [B]; returns float32 [B, embedding_dim]."""
    proj, bias = kparams["proj"], kparams["bias"]
    n_cat, n_col, n_fab = kparams["n_cat"], kparams["n_col"], kparams["n_fab"]
    E = kparams["emb_dim"]
    Kp, Ep = proj.shape
    B = category.shape[0]
    Bp = _round_up(max(B, SUBLANE), SUBLANE)

    # Clamp ids (no in-kernel bounds checks) and pre-offset col/fab into the
    # concatenated table's index space.
    cat = jnp.clip(category.astype(jnp.int32), 0, n_cat - 1)
    col = jnp.clip(color.astype(jnp.int32), 0, n_col - 1) + n_cat
    fab = jnp.clip(fabric.astype(jnp.int32), 0, n_fab - 1) + n_cat + n_col

    def _pad_ids(x):
        return jnp.zeros((Bp, 1), jnp.int32).at[:B, 0].set(x)

    cat_p, col_p, fab_p = _pad_ids(cat), _pad_ids(col), _pad_ids(fab)

    if train:
        if key is None:
            key = jax.random.PRNGKey(0)
        rand = jax.random.uniform(key, (Bp, Ep), jnp.float32)
    else:
        rand = jnp.ones((Bp, Ep), jnp.float32)  # unused when train=False

    kernel = functools.partial(_text_embedder_kernel, train=train)

    out = pl.pallas_call(
        kernel,
        out_shape=jax.ShapeDtypeStruct((Bp, Ep), jnp.float32),
        grid=(1,),
        in_specs=[
            pl.BlockSpec((Bp, 1), lambda i: (0, 0)),
            pl.BlockSpec((Bp, 1), lambda i: (0, 0)),
            pl.BlockSpec((Bp, 1), lambda i: (0, 0)),
            pl.BlockSpec((Kp, Ep), lambda i: (0, 0)),
            pl.BlockSpec((1, Ep), lambda i: (0, 0)),
            pl.BlockSpec((Bp, Ep), lambda i: (0, 0)),
        ],
        out_specs=pl.BlockSpec((Bp, Ep), lambda i: (0, 0)),
        compiler_params=pltpu.CompilerParams(
            dimension_semantics=("arbitrary",)
        ),
    )(cat_p, col_p, fab_p, proj, bias, rand)

    return out[:B, :E]


def reference_forward(category, color, fabric, params):
    """Plain-JAX reference on the raw params (eval mode, dropout = identity)."""
    cat_tab, col_tab, fab_tab, w_t, b = params
    pooled = (cat_tab[category] + col_tab[color] + fab_tab[fabric]) / 3.0
    return jnp.matmul(pooled, w_t, precision=lax.Precision.HIGHEST) + b


if __name__ == "__main__":
    key = jax.random.PRNGKey(0)
    embedding_dim = 32
    n_cat, n_col, n_fab = 8, 6, 5
    B = 4

    params = init_params(key, embedding_dim, n_cat, n_col, n_fab)
    kparams = prepare_kernel_params(params)

    kc, kl, kf = jax.random.split(jax.random.PRNGKey(1), 3)
    category = jax.random.randint(kc, (B,), 0, n_cat, dtype=jnp.int32)
    color = jax.random.randint(kl, (B,), 0, n_col, dtype=jnp.int32)
    fabric = jax.random.randint(kf, (B,), 0, n_fab, dtype=jnp.int32)

    # Eval-mode run (dropout identity) — checked against plain-JAX reference.
    out_eval = text_embedder_forward(category, color, fabric, kparams, train=False)
    out_eval = jax.block_until_ready(out_eval)
    ref = reference_forward(category, color, fabric, params)
    assert out_eval.shape == (B, embedding_dim)
    assert jnp.allclose(out_eval, ref, atol=1e-4, rtol=1e-4), "mismatch vs reference"

    # Train-mode run (stochastic dropout, deterministic key).
    out_train = text_embedder_forward(
        category, color, fabric, kparams, key=jax.random.PRNGKey(42), train=True
    )
    out_train = jax.block_until_ready(out_train)
    assert out_train.shape == (B, embedding_dim)

    print("KERNEL_OK")
</pallas_src>

<mosaic_0001>
module attributes {stable_mosaic.version = 11 : i64} {
  func.func @_text_embedder_kernel(%arg0: i32, %arg1: memref<8x1xi32, #tpu.memory_space<vmem>>, %arg2: memref<8x1xi32, #tpu.memory_space<vmem>>, %arg3: memref<8x1xi32, #tpu.memory_space<vmem>>, %arg4: memref<128x128xf32, #tpu.memory_space<vmem>>, %arg5: memref<1x128xf32, #tpu.memory_space<vmem>>, %arg6: memref<8x128xf32, #tpu.memory_space<vmem>>, %arg7: memref<8x128xf32, #tpu.memory_space<vmem>>) attributes {dimension_semantics = [#tpu.dimension_semantics<arbitrary>], iteration_bounds = array<i64: 1>, scalar_prefetch = 0 : i64, scratch_operands = 0 : i64, tpu.core_type = #tpu.core_type<tc>, window_params = [{pipeline_mode = #tpu.pipeline_mode<synchronous>, transform_indices = @transform_0, window_bounds = array<i64: 8, 1>}, {pipeline_mode = #tpu.pipeline_mode<synchronous>, transform_indices = @transform_1, window_bounds = array<i64: 8, 1>}, {pipeline_mode = #tpu.pipeline_mode<synchronous>, transform_indices = @transform_2, window_bounds = array<i64: 8, 1>}, {pipeline_mode = #tpu.pipeline_mode<synchronous>, transform_indices = @transform_3, window_bounds = array<i64: 128, 128>}, {pipeline_mode = #tpu.pipeline_mode<synchronous>, transform_indices = @transform_4, window_bounds = array<i64: 1, 128>}, {pipeline_mode = #tpu.pipeline_mode<synchronous>, transform_indices = @transform_5, window_bounds = array<i64: 8, 128>}, {pipeline_mode = #tpu.pipeline_mode<synchronous>, transform_indices = @transform_6, window_bounds = array<i64: 8, 128>}]} {
    %0 = tpu.iota {dimensions = array<i32: 1>} : vector<8x128xi32>
    %c0 = arith.constant 0 : index
    %c0_0 = arith.constant 0 : index
    %1 = vector.load %arg1[%c0, %c0_0] : memref<8x1xi32, #tpu.memory_space<vmem>>, vector<8x1xi32>
    %2 = vector.broadcast %1 : vector<8x1xi32> to vector<8x128xi32>
    %3 = arith.cmpi eq, %0, %2 : vector<8x128xi32>
    %c0_1 = arith.constant 0 : index
    %c0_2 = arith.constant 0 : index
    %4 = vector.load %arg2[%c0_1, %c0_2] : memref<8x1xi32, #tpu.memory_space<vmem>>, vector<8x1xi32>
    %5 = vector.broadcast %4 : vector<8x1xi32> to vector<8x128xi32>
    %6 = arith.cmpi eq, %0, %5 : vector<8x128xi32>
    %7 = arith.ori %3, %6 : vector<8x128xi1>
    %c0_3 = arith.constant 0 : index
    %c0_4 = arith.constant 0 : index
    %8 = vector.load %arg3[%c0_3, %c0_4] : memref<8x1xi32, #tpu.memory_space<vmem>>, vector<8x1xi32>
    %9 = vector.broadcast %8 : vector<8x1xi32> to vector<8x128xi32>
    %10 = arith.cmpi eq, %0, %9 : vector<8x128xi32>
    %11 = arith.ori %7, %10 : vector<8x128xi1>
    %12 = arith.extui %11 : vector<8x128xi1> to vector<8x128xi32>
    %13 = arith.sitofp %12 : vector<8x128xi32> to vector<8x128xf32>
    %c0_5 = arith.constant 0 : index
    %c0_6 = arith.constant 0 : index
    %14 = vector.load %arg4[%c0_5, %c0_6] : memref<128x128xf32, #tpu.memory_space<vmem>>, vector<128x128xf32>
    %cst = arith.constant dense<0.000000e+00> : vector<8x128xf32>
    %15 = tpu.matmul %13, %14, %cst {dimension_numbers = #tpu.dot_dimension_numbers<[1], [0], [0], [1], [0, 0, 1, 1], [], []>, precision = #tpu.contract_precision<fp32>} : vector<8x128xf32>, vector<128x128xf32>, vector<8x128xf32> -> vector<8x128xf32>
    %cst_7 = arith.constant 0.333333343 : f32
    %16 = vector.broadcast %cst_7 : f32 to vector<8x128xf32>
    %17 = arith.mulf %15, %16 : vector<8x128xf32>
    %c0_8 = arith.constant 0 : index
    %c0_9 = arith.constant 0 : index
    %18 = vector.load %arg5[%c0_8, %c0_9] : memref<1x128xf32, #tpu.memory_space<vmem>>, vector<1x128xf32>
    %19 = vector.broadcast %18 : vector<1x128xf32> to vector<8x128xf32>
    %20 = arith.addf %17, %19 : vector<8x128xf32>
    %c0_10 = arith.constant 0 : index
    %c0_11 = arith.constant 0 : index
    %21 = vector.load %arg7[%c0_10, %c0_11] : memref<8x128xf32, #tpu.memory_space<vmem>>, vector<8x128xf32>
    tpu.vector_store %arg7[%c0_10, %c0_11], %20 {strides = array<i32>} : memref<8x128xf32, #tpu.memory_space<vmem>>, vector<8x128xf32>,
    return
  }
  func.func @transform_0(%arg0: i32) -> (i32, i32) {
    %c0_i32 = arith.constant 0 : i32
    %c0_i32_0 = arith.constant 0 : i32
    %c0_i32_1 = arith.constant 0 : i32
    return %c0_i32, %c0_i32_0 : i32, i32
  }
  func.func @transform_1(%arg0: i32) -> (i32, i32) {
    %c0_i32 = arith.constant 0 : i32
    %c0_i32_0 = arith.constant 0 : i32
    %c0_i32_1 = arith.constant 0 : i32
    return %c0_i32, %c0_i32_0 : i32, i32
  }
  func.func @transform_2(%arg0: i32) -> (i32, i32) {
    %c0_i32 = arith.constant 0 : i32
    %c0_i32_0 = arith.constant 0 : i32
    %c0_i32_1 = arith.constant 0 : i32
    return %c0_i32, %c0_i32_0 : i32, i32
  }
  func.func @transform_3(%arg0: i32) -> (i32, i32) {
    %c0_i32 = arith.constant 0 : i32
    %c0_i32_0 = arith.constant 0 : i32
    %c0_i32_1 = arith.constant 0 : i32
    return %c0_i32, %c0_i32_0 : i32, i32
  }
  func.func @transform_4(%arg0: i32) -> (i32, i32) {
    %c0_i32 = arith.constant 0 : i32
    %c0_i32_0 = arith.constant 0 : i32
    %c0_i32_1 = arith.constant 0 : i32
    return %c0_i32, %c0_i32_0 : i32, i32
  }
  func.func @transform_5(%arg0: i32) -> (i32, i32) {
    %c0_i32 = arith.constant 0 : i32
    %c0_i32_0 = arith.constant 0 : i32
    %c0_i32_1 = arith.constant 0 : i32
    return %c0_i32, %c0_i32_0 : i32, i32
  }
  func.func @transform_6(%arg0: i32) -> (i32, i32) {
    %c0_i32 = arith.constant 0 : i32
    %c0_i32_0 = arith.constant 0 : i32
    %c0_i32_1 = arith.constant 0 : i32
    return %c0_i32, %c0_i32_0 : i32, i32
  }
}

</mosaic_0001>

<bundles_post_ra>
// kernel: tpu_custom_call.1
= control target key start
LH: loop header
LB: loop body
LE: loop exit
PB: predicated region body
PF: predicated region fallthrough
CT: control target
= control target key end

     0   :  { %11 = vsyncpa [#allocation3], 0  ;;  %s1542_s0 = inlined_call_operand.vmem [shape: s32[8,1], index: 0, kind: input, shape index: {}]   ;;  %s1543_s1 = inlined_call_operand.vmem [shape: s32[8,1], index: 1, kind: input, shape index: {}]   ;;  %s1544_s2 = inlined_call_operand.vmem [shape: s32[8,1], index: 2, kind: input, shape index: {}]   ;;  %s1545_s3 = inlined_call_operand.hbm [shape: f32[128,128], index: 3, kind: input, shape index: {}]   ;;  %s1546_s4 = inlined_call_operand.vmem [shape: f32[1,128], index: 4, kind: input, shape index: {}]   ;;  %s1547_s5 = inlined_call_operand.vmem [shape: f32[8,128], index: 5, kind: input, shape index: {}]   ;;  %s1548_s6 = inlined_call_operand.hbm [shape: f32[8,128], index: 6, kind: output, shape index: {}]  }
   0x1   :  { %12 = vsyncpa [#allocation4], 0  ;;  %s1112_s21 = smov [#allocation2]  }
   0x2   :  { %s24_s22 = sshll.u32 %s1112_s21, 4  ;;  %s25_s22 = int_to_ptr.vmem [resolvable:$true] %s24_s22 }
   0x3   :  { %s1076_s23 = scalar_lea.vmem %s25_s22, 2048  ;;  %p1081_p1 = scmp.lt.s32.totalorder %s25_s22, %s25_s22 }
   0x4   :  { %p1077_p0 = scmp.ne.s32.totalorder %s25_s22, %s1076_s23  ;;  %p1082_p2 = scmp.lt.s32.totalorder %s1076_s23, %s1076_s23 }
   0x6   :  { %p1083_p3 = por %p1082_p2, %p1081_p1 }
   0x8   :  { %p1084_p4 = pnand %p1083_p3, %p1077_p0 }
   0xa   :  { %1087 = shalt.err (!%p1084_p4)
}
   0xb   :  { %s1113_s24 = smov 128   ;;  %s1114_s25 = smov 8  }
   0xc   :  { %30 = dma.hbm_to_vmem [thread:$0]  %s1545_s3, 2048, %s25_s22, [#allocation3], %s1113_s24, %s1113_s24, %s1114_s25  }
   0xd   :  { %1108 = dma.done.wait [#allocation3], 2048  }
   0xe   :  { %1109 = vsyncadd [#allocation3], 4294965248  ;;  %v1115_v0 = vmov 0   ;;  %v1116_v1 = vmov 0.0   ;;  %v40_v2 = vld [vmem:[%s1542_s0] sm:$0xff]  ;;  %v74_v5 = vld [vmem:[#allocation2 + $0x78] sm:$0xff] }
   0xf   :  { %1066 = vset.pattern.permute.xlu0 %v1115_v0  ;;  %1067 = vset.pattern.permute.xlu1 %v1115_v0  ;;  %v45_v3 = vld [vmem:[%s1543_s1] sm:$0xff]  ;;  %v73_v6 = vld [vmem:[#allocation2 + $0x70] sm:$0xff]  ;;  %v72_v7 = vld [vmem:[#allocation2 + $0x68] sm:$0xff]  ;;  %v1169_v8 = vand.u32 4294901760, %v74_v5  ;;  %vm1117_vm0 = vmmov 0  }
  0x10   :  { %883 = vmatprep.subr.mxu1 %v1116_v1  ;;  %848 = vmatprep.subr.mxu0 %v1116_v1  ;;  %v51_v4 = vld [vmem:[%s1544_s2] sm:$0xff]  ;;  %v1171_v9 = vand.u32 4294901760, %v73_v6  ;;  %v1173_v10 = vand.u32 4294901760, %v72_v7  ;;  %v70_v12 = vld [vmem:[#allocation2 + $0x58] sm:$0xff]  ;;  %v69_v13 = vld [vmem:[#allocation2 + $0x50] sm:$0xff]  ;;  %s1119_s2 = smov [#allocation5]  }
  0x11   :  { %42 = vperm.xlu0 %1066, %v40_v2   ;;  %53 = vperm.xlu1 %1067, %v51_v4   ;;  %v71_v11 = vld [vmem:[#allocation2 + $0x60] sm:$0xff]  ;;  %v1177_v15 = vand.u32 4294901760, %v70_v12  ;;  %v1179_v16 = vand.u32 4294901760, %v69_v13  ;;  %v68_v17 = vld [vmem:[#allocation2 + $0x48] sm:$0xff]  ;;  %v1182_v19 = vsub.f32 %v74_v5, %v1169_v8  ;;  %v66_v38 = vld [vmem:[#allocation2 + $0x38] sm:$0xff]  ;;  %s732_s8 = sshll.u32 %s1119_s2, 4  ;;  %s733_s8 = int_to_ptr.vmem [resolvable:$true] %s732_s8 }
  0x12   :  { %v1175_v14 = vand.u32 4294901760, %v71_v11  ;;  %v67_v18 = vld [vmem:[#allocation2 + $0x40] sm:$0xff]  ;;  %v1185_v20 = vsub.f32 %v73_v6, %v1171_v9  ;;  %v1188_v21 = vsub.f32 %v72_v7, %v1173_v10  ;;  %849 = vmatpush3.msra.mxu0 %v1169_v8  ;;  %v1191_v22 = vand.u32 4294901760, %v68_v17  ;;  %v65_v39 = vld [vmem:[#allocation2 + $0x30] sm:$0xff]  ;;  %v64_v40 = vld [vmem:[#allocation2 + $0x28] sm:$0xff]  ;;  %915 = vmatprep.mubr.msk.f32.mxu1 %vm1117_vm0, %v1116_v1  ;;  %s1088_s9 = scalar_lea.vmem %s733_s8, 128  ;;  %p1093_p6 = scmp.lt.s32.totalorder %s733_s8, %s733_s8 }
  0x13   :  { %v1197_v24 = vsub.f32 %v70_v12, %v1177_v15  ;;  %850 = vmatprep.subr.mxu0 %v1116_v1  ;;  %v1201_v25 = vsub.f32 %v69_v13, %v1179_v16  ;;  %v1203_v26 = vand.u32 4294901760, %v67_v18  ;;  %v169_v27 = vand.u32 4294901760, %v1182_v19  ;;  %v63_v46 = vld [vmem:[#allocation2 + $0x20] sm:$0xff]  ;;  %v62_v53 = vld [vmem:[#allocation2 + $0x18] sm:$0xff]  ;;  %v61_v59 = vld [vmem:[#allocation2 + $0x10] sm:$0xff]  ;;  %880 = vmatprep.mubr.msk.f32.mxu0 %vm1117_vm0, %v1116_v1  ;;  %p1089_p5 = scmp.ne.s32.totalorder %s733_s8, %s1088_s9  ;;  %p1094_p7 = scmp.lt.s32.totalorder %s1088_s9, %s1088_s9 }
  0x14   :  { %v1194_v23 = vsub.f32 %v71_v11, %v1175_v14  ;;  %v176_v28 = vand.u32 4294901760, %v1185_v20  ;;  %v183_v29 = vand.u32 4294901760, %v1188_v21  ;;  %851 = vmatpush3.msra.mxu0 %v1171_v9  ;;  %v1213_v32 = vsub.f32 %v68_v17, %v1191_v22  ;;  %v60_v0 = vld [vmem:[#allocation2 + $0x8] sm:$0xff]  ;;  %v59_v11 = vld [vmem:[#allocation2] sm:$0xff] }
  0x15   :  { %47 = vperm.xlu0 %1066, %v45_v3   ;;  %v197_v31 = vand.u32 4294901760, %v1197_v24  ;;  %852 = vmatprep.subr.mxu0 %v1116_v1  ;;  %v170_v33 = vsub.f32 %v1182_v19, %v169_v27  ;;  %v204_v36 = vand.u32 4294901760, %v1201_v25  ;;  %v1228_v37 = vsub.f32 %v67_v18, %v1203_v26  ;;  %p1095_p8 = por %p1094_p7, %p1093_p6 }
  0x16   :  { %v190_v30 = vand.u32 4294901760, %v1194_v23  ;;  %v177_v34 = vsub.f32 %v1185_v20, %v176_v28  ;;  %v184_v35 = vsub.f32 %v1188_v21, %v183_v29  ;;  %853 = vmatpush3.msra.mxu0 %v1173_v10  ;;  %v211_v45 = vand.u32 4294901760, %v1213_v32 }
  0x17   :  { %854 = vmatprep.subr.mxu0 %v1116_v1  ;;  %v171_v41 = vand.u32 4294901760, %v170_v33  ;;  %v198_v44 = vsub.f32 %v1197_v24, %v197_v31  ;;  %v1239_v48 = vand.u32 4294901760, %v66_v38  ;;  %v1242_v49 = vand.u32 4294901760, %v65_v39  ;;  %p1096_p9 = pnand %p1095_p8, %p1089_p5 }
  0x18   :  { %v178_v42 = vand.u32 4294901760, %v177_v34  ;;  %v191_v43 = vsub.f32 %v1194_v23, %v190_v30  ;;  %855 = vmatpush3.msra.mxu0 %v1175_v14  ;;  %v185_v47 = vand.u32 4294901760, %v184_v35  ;;  %v1244_v50 = vand.u32 4294901760, %v64_v40 }
  0x19   :  { %856 = vmatprep.subr.mxu0 %v1116_v1  ;;  %884 = vmatpush3.msra.mxu1 %v171_v41  ;;  %v205_v51 = vsub.f32 %v1201_v25, %v204_v36  ;;  %v218_v52 = vand.u32 4294901760, %v1228_v37  ;;  %v1253_v55 = vsub.f32 %v66_v38, %v1239_v48  ;;  %v1256_v56 = vsub.f32 %v65_v39, %v1242_v49 }
  0x1a   :  { %857 = vmatpush3.msra.mxu0 %v1177_v15  ;;  %885 = vmatprep.subr.mxu1 %v1116_v1  ;;  %v192_v54 = vand.u32 4294901760, %v191_v43  ;;  %v1259_v57 = vand.u32 4294901760, %v63_v46  ;;  %v212_v58 = vsub.f32 %v1213_v32, %v211_v45  ;;  %v199_v60 = vand.u32 4294901760, %v198_v44 }
  0x1b   :  { %858 = vmatprep.subr.mxu0 %v1116_v1  ;;  %886 = vmatpush3.msra.mxu1 %v178_v42  ;;  %v225_v61 = vand.u32 4294901760, %v1253_v55  ;;  %v1268_v62 = vsub.f32 %v64_v40, %v1244_v50  ;;  %v1271_v63 = vand.u32 4294901760, %v62_v53  ;;  %v219_v2 = vsub.f32 %v1228_v37, %v218_v52 }
  0x1c   :  { %859 = vmatpush3.msra.mxu0 %v1179_v16  ;;  %887 = vmatprep.subr.mxu1 %v1116_v1  ;;  %v206_v3 = vand.u32 4294901760, %v205_v51  ;;  %v232_v4 = vand.u32 4294901760, %v1256_v56  ;;  %v1280_v5 = vsub.f32 %v63_v46, %v1259_v57  ;;  %v1283_v6 = vand.u32 4294901760, %v61_v59 }
  0x1d   :  { %860 = vmatprep.subr.mxu0 %v1116_v1  ;;  %888 = vmatpush3.msra.mxu1 %v185_v47  ;;  %v1287_v7 = vand.u32 4294901760, %v60_v0  ;;  %v213_v12 = vand.u32 4294901760, %v212_v58  ;;  %v226_v13 = vsub.f32 %v1253_v55, %v225_v61  ;;  %v239_v17 = vand.u32 4294901760, %v1268_v62 }
  0x1e   :  { %861 = vmatpush3.msra.mxu0 %v1191_v22  ;;  %889 = vmatprep.subr.mxu1 %v1116_v1  ;;  %v1294_v18 = vsub.f32 %v62_v53, %v1271_v63  ;;  %v220_v33 = vand.u32 4294901760, %v219_v2  ;;  %v233_v34 = vsub.f32 %v1256_v56, %v232_v4  ;;  %v246_v35 = vand.u32 4294901760, %v1280_v5 }
  0x1f   :  { %862 = vmatprep.subr.mxu0 %v1116_v1  ;;  %890 = vmatpush3.msra.mxu1 %v192_v54  ;;  %v1304_v38 = vsub.f32 %v61_v59, %v1283_v6  ;;  %v1307_v39 = vand.u32 4294901760, %v59_v11  ;;  %v1312_v40 = vsub.f32 %v60_v0, %v1287_v7  ;;  %v227_v41 = vand.u32 4294901760, %v226_v13 }
  0x20   :  { %863 = vmatpush3.msra.mxu0 %v1203_v26  ;;  %891 = vmatprep.subr.mxu1 %v1116_v1  ;;  %v240_v42 = vsub.f32 %v1268_v62, %v239_v17  ;;  %v253_v43 = vand.u32 4294901760, %v1294_v18  ;;  %v234_v44 = vand.u32 4294901760, %v233_v34  ;;  %v247_v46 = vsub.f32 %v1280_v5, %v246_v35 }
  0x21   :  { %864 = vmatprep.subr.mxu0 %v1116_v1  ;;  %892 = vmatpush3.msra.mxu1 %v199_v60  ;;  %v260_v47 = vand.u32 4294901760, %v1304_v38  ;;  %v1326_v51 = vsub.f32 %v59_v11, %v1307_v39  ;;  %v267_v58 = vand.u32 4294901760, %v1312_v40  ;;  %v38_v34 = vlaneseq }
  0x22   :  { %865 = vmatpush3.msra.mxu0 %v1239_v48  ;;  %893 = vmatprep.subr.mxu1 %v1116_v1  ;;  %v241_v53 = vand.u32 4294901760, %v240_v42  ;;  %v254_v54 = vsub.f32 %v1294_v18, %v253_v43  ;;  %v248_v59 = vand.u32 4294901760, %v247_v46 }
  0x23   :  { %866 = vmatprep.subr.mxu0 %v1116_v1  ;;  %894 = vmatpush3.msra.mxu1 %v206_v3  ;;  %v261_v60 = vsub.f32 %v1304_v38, %v260_v47  ;;  %v274_v0 = vand.u32 4294901760, %v1326_v51  ;;  %v268_v3 = vsub.f32 %v1312_v40, %v267_v58  ;;  %v39_v42 = vand.u32 127, %v38_v34 }
  0x24   :  { %867 = vmatpush3.msra.mxu0 %v1242_v49  ;;  %895 = vmatprep.subr.mxu1 %v1116_v1  ;;  %v255_v2 = vand.u32 4294901760, %v254_v54 }
  0x25   :  { %868 = vmatprep.subr.mxu0 %v1116_v1  ;;  %896 = vmatpush3.msra.mxu1 %v213_v12  ;;  %v262_v11 = vand.u32 4294901760, %v261_v60  ;;  %v275_v12 = vsub.f32 %v1326_v51, %v274_v0  ;;  %v269_v13 = vand.u32 4294901760, %v268_v3 }
  0x26   :  { %869 = vmatpush3.msra.mxu0 %v1244_v50  ;;  %897 = vmatprep.subr.mxu1 %v1116_v1 }
  0x27   :  { %870 = vmatprep.subr.mxu0 %v1116_v1  ;;  %898 = vmatpush3.msra.mxu1 %v220_v33  ;;  %v276_v33 = vand.u32 4294901760, %v275_v12 }
  0x28   :  { %871 = vmatpush3.msra.mxu0 %v1259_v57  ;;  %899 = vmatprep.subr.mxu1 %v1116_v1 }
  0x29   :  { %900 = vmatpush3.msra.mxu1 %v227_v41  ;;  %872 = vmatprep.subr.mxu0 %v1116_v1 }
  0x2a   :  { %901 = vmatprep.subr.mxu1 %v1116_v1  ;;  %873 = vmatpush3.msra.mxu0 %v1271_v63 }
  0x2b   :  { %902 = vmatpush3.msra.mxu1 %v234_v44  ;;  %874 = vmatprep.subr.mxu0 %v1116_v1 }
  0x2c   :  { %903 = vmatprep.subr.mxu1 %v1116_v1  ;;  %875 = vmatpush3.msra.mxu0 %v1283_v6 }
  0x2d   :  { %904 = vmatpush3.msra.mxu1 %v241_v53  ;;  %876 = vmatprep.subr.mxu0 %v1116_v1 }
  0x2e   :  { %905 = vmatprep.subr.mxu1 %v1116_v1  ;;  %877 = vmatpush3.msra.mxu0 %v1287_v7 }
  0x2f   :  { %906 = vmatpush3.msra.mxu1 %v248_v59  ;;  %878 = vmatprep.subr.mxu0 %v1116_v1  ;;  %v1118_v59 = vmov 1.0  }
  0x30   :  { %907 = vmatprep.subr.mxu1 %v1116_v1  ;;  %879 = vmatpush3.msra.mxu0 %v1307_v39 }
  0x31   :  { %908 = vmatpush3.msra.mxu1 %v255_v2  ;;  %918 = vmatprep.subr.mxu0 %v1116_v1 }
  0x32   :  { %909 = vmatprep.subr.mxu1 %v1116_v1 }
  0x33   :  { %910 = vmatpush3.msra.mxu1 %v262_v11 }
  0x34   :  { %911 = vmatprep.subr.mxu1 %v1116_v1 }
  0x35   :  { %912 = vmatpush3.msra.mxu1 %v269_v13 }
  0x36   :  { %913 = vmatprep.subr.mxu1 %v1116_v1 }
  0x37   :  { %914 = vmatpush3.msra.mxu1 %v276_v33 }
  0x38   :  { %953 = vmatprep.subr.mxu1 %v1116_v1 }
  0x8c   :  { %v43_v41 = vpop.permute.xlu0 %42  ;;  %v54_v44 = vpop.permute.xlu1 %53 }
  0x8d   :  { %vm55_vm1 = vcmp.eq.s32.totalorder %v39_v42, %v54_v44  ;;  %vm44_vm2 = vcmp.eq.s32.totalorder %v39_v42, %v43_v41 }
  0x90   :  { %v48_v46 = vpop.permute.xlu0 %47 }
  0x91   :  { %vm49_vm3 = vcmp.eq.s32.totalorder %v39_v42, %v48_v46 }
  0x92   :  { %vm50_vm4 = vmor %vm44_vm2, %vm49_vm3 }
  0x93   :  { %vm1365_vm5 = vmor %vm50_vm4, %vm55_vm1 }
  0x94   :  { %v741_v54 = vsel %vm1365_vm5, 1.0, %v1116_v1  ;;  %916 = vmatmul.mubr.msk.f32.vlgmr.msra.gmra.mxu1 %vm1365_vm5, %v1118_v59 }
  0x95   :  { %v1375_v60 = vsub.f32 %v741_v54, %v741_v54  ;;  %954 = vmatpush3.msra.mxu1 %v1169_v8  ;;  %985 = vmatprep.mubr.msk.f32.mxu1 %vm1117_vm0, %v1116_v1 }
  0x96   :  { %955 = vmatprep.subr.mxu1 %v1116_v1 }
  0x97   :  { %956 = vmatpush3.msra.mxu1 %v1171_v9  ;;  %v158_v2 = vand.u32 4294901760, %v1375_v60 }
  0x98   :  { %957 = vmatprep.subr.mxu1 %v1116_v1 }
  0x99   :  { %958 = vmatpush3.msra.mxu1 %v1173_v10  ;;  %v159_v3 = vsub.f32 %v1375_v60, %v158_v2 }
  0x9a   :  { %959 = vmatprep.subr.mxu1 %v1116_v1 }
  0x9b   :  { %960 = vmatpush3.msra.mxu1 %v1175_v14  ;;  %v160_v11 = vand.u32 4294901760, %v159_v3 }
  0x9c   :  { %961 = vmatprep.subr.mxu1 %v1116_v1 }
  0x9d   :  { %962 = vmatpush3.msra.mxu1 %v1177_v15  ;;  %881 = vmatmul.mubr.f32.vlgmr.msra.gmra.mxu0 %v160_v11 }
  0x9e   :  { %919 = vmatpush3.msra.mxu0 %v1182_v19  ;;  %963 = vmatprep.subr.mxu1 %v1116_v1 }
  0x9f   :  { %920 = vmatprep.subr.mxu0 %v1116_v1  ;;  %964 = vmatpush3.msra.mxu1 %v1179_v16 }
  0xa0   :  { %921 = vmatpush3.msra.mxu0 %v1185_v20  ;;  %965 = vmatprep.subr.mxu1 %v1116_v1 }
  0xa1   :  { %922 = vmatprep.subr.mxu0 %v1116_v1  ;;  %966 = vmatpush3.msra.mxu1 %v1191_v22 }
  0xa2   :  { %923 = vmatpush3.msra.mxu0 %v1188_v21  ;;  %967 = vmatprep.subr.mxu1 %v1116_v1 }
  0xa3   :  { %924 = vmatprep.subr.mxu0 %v1116_v1  ;;  %968 = vmatpush3.msra.mxu1 %v1203_v26 }
  0xa4   :  { %925 = vmatpush3.msra.mxu0 %v1194_v23  ;;  %969 = vmatprep.subr.mxu1 %v1116_v1 }
  0xa5   :  { %926 = vmatprep.subr.mxu0 %v1116_v1  ;;  %970 = vmatpush3.msra.mxu1 %v1239_v48 }
  0xa6   :  { %927 = vmatpush3.msra.mxu0 %v1197_v24  ;;  %971 = vmatprep.subr.mxu1 %v1116_v1 }
  0xa7   :  { %928 = vmatprep.subr.mxu0 %v1116_v1  ;;  %972 = vmatpush3.msra.mxu1 %v1242_v49 }
  0xa8   :  { %929 = vmatpush3.msra.mxu0 %v1201_v25  ;;  %973 = vmatprep.subr.mxu1 %v1116_v1 }
  0xa9   :  { %930 = vmatprep.subr.mxu0 %v1116_v1  ;;  %974 = vmatpush3.msra.mxu1 %v1244_v50 }
  0xaa   :  { %931 = vmatpush3.msra.mxu0 %v1213_v32  ;;  %975 = vmatprep.subr.mxu1 %v1116_v1 }
  0xab   :  { %932 = vmatprep.subr.mxu0 %v1116_v1  ;;  %976 = vmatpush3.msra.mxu1 %v1259_v57 }
  0xac   :  { %933 = vmatpush3.msra.mxu0 %v1228_v37  ;;  %977 = vmatprep.subr.mxu1 %v1116_v1 }
  0xad   :  { %934 = vmatprep.subr.mxu0 %v1116_v1  ;;  %978 = vmatpush3.msra.mxu1 %v1271_v63 }
  0xae   :  { %935 = vmatpush3.msra.mxu0 %v1253_v55  ;;  %979 = vmatprep.subr.mxu1 %v1116_v1 }
  0xaf   :  { %936 = vmatprep.subr.mxu0 %v1116_v1  ;;  %980 = vmatpush3.msra.mxu1 %v1283_v6 }
  0xb0   :  { %937 = vmatpush3.msra.mxu0 %v1256_v56  ;;  %981 = vmatprep.subr.mxu1 %v1116_v1 }
  0xb1   :  { %938 = vmatprep.subr.mxu0 %v1116_v1  ;;  %982 = vmatpush3.msra.mxu1 %v1287_v7 }
  0xb2   :  { %939 = vmatpush3.msra.mxu0 %v1268_v62  ;;  %983 = vmatprep.subr.mxu1 %v1116_v1 }
  0xb3   :  { %940 = vmatprep.subr.mxu0 %v1116_v1  ;;  %984 = vmatpush3.msra.mxu1 %v1307_v39 }
  0xb4   :  { %941 = vmatpush3.msra.mxu0 %v1280_v5  ;;  %986 = vmatmul.mubr.f32.vlgmr.msra.gmra.mxu1 %v158_v2 }
  0xb5   :  { %1023 = vmatprep.subr.mxu1 %v1116_v1  ;;  %942 = vmatprep.subr.mxu0 %v1116_v1 }
  0xb6   :  { %1024 = vmatpush3.msra.mxu1 %v1169_v8  ;;  %943 = vmatpush3.msra.mxu0 %v1294_v18 }
  0xb7   :  { %1025 = vmatprep.subr.mxu1 %v1116_v1  ;;  %944 = vmatprep.subr.mxu0 %v1116_v1 }
  0xb8   :  { %1026 = vmatpush3.msra.mxu1 %v1171_v9  ;;  %945 = vmatpush3.msra.mxu0 %v1304_v38 }
  0xb9   :  { %1027 = vmatprep.subr.mxu1 %v1116_v1  ;;  %946 = vmatprep.subr.mxu0 %v1116_v1 }
  0xba   :  { %1028 = vmatpush3.msra.mxu1 %v1173_v10  ;;  %947 = vmatpush3.msra.mxu0 %v1312_v40 }
  0xbb   :  { %1029 = vmatprep.subr.mxu1 %v1116_v1  ;;  %948 = vmatprep.subr.mxu0 %v1116_v1 }
  0xbc   :  { %1030 = vmatpush3.msra.mxu1 %v1175_v14  ;;  %949 = vmatpush3.msra.mxu0 %v1326_v51 }
  0xbd   :  { %950 = vmatprep.mubr.msk.f32.mxu0 %vm1117_vm0, %v1116_v1  ;;  %1031 = vmatprep.subr.mxu1 %v1116_v1 }
  0xbe   :  { %951 = vmatmul.mubr.f32.vlgmr.msra.gmra.mxu0 %v1375_v60  ;;  %988 = vmatprep.subr.mxu0 %v1116_v1 }
  0xbf   :  { %1032 = vmatpush3.msra.mxu1 %v1177_v15  ;;  %989 = vmatpush3.msra.mxu0 %v169_v27 }
  0xc0   :  { %1033 = vmatprep.subr.mxu1 %v1116_v1  ;;  %990 = vmatprep.subr.mxu0 %v1116_v1 }
  0xc1   :  { %1034 = vmatpush3.msra.mxu1 %v1179_v16  ;;  %991 = vmatpush3.msra.mxu0 %v176_v28 }
  0xc2   :  { %1035 = vmatprep.subr.mxu1 %v1116_v1  ;;  %992 = vmatprep.subr.mxu0 %v1116_v1 }
  0xc3   :  { %1036 = vmatpush3.msra.mxu1 %v1191_v22  ;;  %993 = vmatpush3.msra.mxu0 %v183_v29  ;;  %v745_v29 = vld [vmem:[%s1546_s4] ss:$0 sm:$0xff] }
  0xc4   :  { %1037 = vmatprep.subr.mxu1 %v1116_v1  ;;  %994 = vmatprep.subr.mxu0 %v1116_v1 }
  0xc5   :  { %1038 = vmatpush3.msra.mxu1 %v1203_v26  ;;  %995 = vmatpush3.msra.mxu0 %v190_v30 }
  0xc6   :  { %1039 = vmatprep.subr.mxu1 %v1116_v1  ;;  %996 = vmatprep.subr.mxu0 %v1116_v1 }
  0xc7   :  { %1040 = vmatpush3.msra.mxu1 %v1239_v48  ;;  %997 = vmatpush3.msra.mxu0 %v197_v31 }
  0xc8   :  { %1041 = vmatprep.subr.mxu1 %v1116_v1  ;;  %998 = vmatprep.subr.mxu0 %v1116_v1 }
  0xc9   :  { %1042 = vmatpush3.msra.mxu1 %v1242_v49  ;;  %999 = vmatpush3.msra.mxu0 %v204_v36 }
  0xca   :  { %1043 = vmatprep.subr.mxu1 %v1116_v1  ;;  %1000 = vmatprep.subr.mxu0 %v1116_v1 }
  0xcb   :  { %1044 = vmatpush3.msra.mxu1 %v1244_v50  ;;  %1001 = vmatpush3.msra.mxu0 %v211_v45 }
  0xcc   :  { %1045 = vmatprep.subr.mxu1 %v1116_v1  ;;  %1002 = vmatprep.subr.mxu0 %v1116_v1 }
  0xcd   :  { %1046 = vmatpush3.msra.mxu1 %v1259_v57  ;;  %1003 = vmatpush3.msra.mxu0 %v218_v52 }
  0xce   :  { %1047 = vmatprep.subr.mxu1 %v1116_v1  ;;  %1004 = vmatprep.subr.mxu0 %v1116_v1 }
  0xcf   :  { %1048 = vmatpush3.msra.mxu1 %v1271_v63  ;;  %1005 = vmatpush3.msra.mxu0 %v225_v61 }
  0xd0   :  { %1049 = vmatprep.subr.mxu1 %v1116_v1  ;;  %1006 = vmatprep.subr.mxu0 %v1116_v1 }
  0xd1   :  { %1050 = vmatpush3.msra.mxu1 %v1283_v6  ;;  %1007 = vmatpush3.msra.mxu0 %v232_v4 }
  0xd2   :  { %1051 = vmatprep.subr.mxu1 %v1116_v1  ;;  %1008 = vmatprep.subr.mxu0 %v1116_v1 }
  0xd3   :  { %1052 = vmatpush3.msra.mxu1 %v1287_v7  ;;  %1009 = vmatpush3.msra.mxu0 %v239_v17 }
  0xd4   :  { %1053 = vmatprep.subr.mxu1 %v1116_v1  ;;  %1010 = vmatprep.subr.mxu0 %v1116_v1 }
  0xd5   :  { %1054 = vmatpush3.msra.mxu1 %v1307_v39  ;;  %1055 = vmatprep.mubr.msk.f32.mxu1 %vm1117_vm0, %v1116_v1 }
  0xd6   :  { %1011 = vmatpush3.msra.mxu0 %v246_v35  ;;  %1056 = vmatmul.mubr.msk.f32.vlgmr.msra.gmra.mxu1 %vm1365_vm5, %v1118_v59 }
  0xd7   :  { %1012 = vmatprep.subr.mxu0 %v1116_v1  ;;  %1020 = vmatprep.mubr.msk.f32.mxu0 %vm1117_vm0, %v1116_v1 }
  0xd8   :  { %1013 = vmatpush3.msra.mxu0 %v253_v43 }
  0xd9   :  { %1014 = vmatprep.subr.mxu0 %v1116_v1 }
  0xda   :  { %1015 = vmatpush3.msra.mxu0 %v260_v47 }
  0xdb   :  { %1016 = vmatprep.subr.mxu0 %v1116_v1 }
  0xdc   :  { %1017 = vmatpush3.msra.mxu0 %v267_v58 }
  0xdd   :  { %1018 = vmatprep.subr.mxu0 %v1116_v1 }
  0xde   :  { %1019 = vmatpush3.msra.mxu0 %v274_v0 }
  0xdf   :  { %1021 = vmatmul.mubr.msk.f32.vlgmr.msra.gmra.mxu0 %vm1365_vm5, %v1118_v59 }
 0x154   :  { %v313_v8 = vpop.f32.mrf.mxu1 }
 0x156   :  { %v917_v9 = vpop.f32.mrf.mxu1 }
 0x15d   :  { %v162_v10 = vpop.f32.mrf.mxu0 }
 0x15e   :  { %v314_v22 = vadd.f32 %v313_v8, %v162_v10 }
 0x15f   :  { %v882_v14 = vpop.f32.mrf.mxu0 }
 0x174   :  { %v506_v15 = vpop.f32.mrf.mxu1 }
 0x176   :  { %v987_v16 = vpop.f32.mrf.mxu1 }
 0x17e   :  { %v417_v19 = vpop.f32.mrf.mxu0 }
 0x17f   :  { %v418_v24 = vadd.f32 %v417_v19, %v314_v22 }
 0x180   :  { %v952_v20 = vpop.f32.mrf.mxu0 }
 0x181   :  { %v507_v1 = vadd.f32 %v506_v15, %v418_v24 }
 0x196   :  { %v712_v21 = vpop.f32.mrf.mxu1 }
 0x198   :  { %v1057_v23 = vpop.f32.mrf.mxu1 }
 0x19f   :  { %v625_v25 = vpop.f32.mrf.mxu0 }
 0x1a0   :  { %v626_v26 = vadd.f32 %v625_v25, %v507_v1 }
 0x1a1   :  { %v1022_v27 = vpop.f32.mrf.mxu0 }
 0x1a2   :  { %v713_v28 = vadd.f32 %v712_v21, %v626_v26 }
 0x1a4   :  { %v716_v30 = vmul.f32 0.33333334, %v713_v28 }
 0x1a6   :  { %v724_v31 = vadd.f32 %v745_v29, %v716_v30 }
 0x1a8   :  { %725 = vst [vmem:[#allocation5] sm:$0xff] %v724_v31 }
 0x1a9   :  { %1099 = shalt.err (!%p1096_p9)
}
 0x1aa   :  { %735 = dma.vmem_to_hbm [thread:$0]  %s733_s8, 128, %s1548_s6, [#allocation4]  }
 0x1ab   :  { %1110 = dma.done.wait [#allocation4], 128  }
 0x1ac   :  { %1111 = vsyncadd [#allocation4], 4294967168 }
 0x1ad   :  { %739 = vsyncpa [#allocation3], 1 }
 0x1ae   :  { %740 = vsyncpa [#allocation4], 1 }

</bundles_post_ra>
